<compile_context>
chip_gen: v7x
topology: tpu7x:2x2x1
jax: 0.10.0
libtpu: 0.0.40
codegen_flags: <defaults>
</compile_context>

<pallas_src>
import functools

import jax
import jax.numpy as jnp
from jax.experimental import pallas as pl
from jax.experimental.pallas import tpu as pltpu


def _round_up(x: int, m: int) -> int:
    return pl.cdiv(x, m) * m


def _layernorm_bf16(x_f32, eps):
    """PyTorch-LN core (gamma/beta folded into the Linear): returns (x-mean)/(std+eps) bf16."""
    h = x_f32.shape[-1]
    mean = jnp.sum(x_f32, axis=-1, keepdims=True) * (1.0 / h)
    xc = x_f32 - mean
    # centered variance: immune to cancellation; extra (TM,H) VPU pass is free when
    # the kernel is DMA/MXU bound.
    var = jnp.sum(xc * xc, axis=-1, keepdims=True) * (1.0 / (h - 1))   # unbiased (ddof=1)
    inv = pl.reciprocal(jnp.sqrt(var) + eps, approx=False)             # (TM,1), exact
    return (xc * inv).astype(jnp.bfloat16)


def _sublayer_kernel_full(x_ref, w_ref, b_ref, o_ref, *, eps: float):
    # x_ref: (TM, H) rows; w_ref: (H, H) bf16 (gamma folded); b_ref: (1, H) f32 (beta folded)
    x = x_ref[...].astype(jnp.float32)
    normed = _layernorm_bf16(x, eps)
    # sublayer = Linear(H, H): bf16 MXU operands, f32 accumulation.
    y = jnp.dot(normed, w_ref[...], preferred_element_type=jnp.float32) + b_ref[...]
    # dropout (eval) == identity; residual add in f32.
    o_ref[...] = (x + y).astype(o_ref.dtype)


def _sublayer_kernel_ntiled(x_ref, xres_ref, w_ref, b_ref, o_ref, n_ref, *, eps: float):
    # x_ref: (TM, H) full rows (for LN); xres_ref: (TM, TN) residual columns;
    # w_ref: (H, TN) bf16; b_ref: (1, TN) f32; n_ref: (TM, H) bf16 scratch.
    @pl.when(pl.program_id(1) == 0)
    def _():
        n_ref[...] = _layernorm_bf16(x_ref[...].astype(jnp.float32), eps)

    y = jnp.dot(n_ref[...], w_ref[...], preferred_element_type=jnp.float32) + b_ref[...]
    o_ref[...] = (xres_ref[...].astype(jnp.float32) + y).astype(o_ref.dtype)


def sublayer_connection(x, gamma, beta, w, b, *, eps=1e-6, row_tile=256, col_tile=None):
    """out = x + Linear(LayerNorm(x)); dropout is inference-mode identity.

    LayerNorm has PyTorch semantics (unbiased std, eps added to std). gamma/beta are
    folded into the Linear params host-side (exact up to the bf16 weight cast; in a real
    model fold once per weight update, not per call).
    """
    B, S, H = x.shape
    rows = B * S
    x2 = x.reshape(rows, H)                       # metadata-only reshape; no pad / no slice

    # Fold LN affine into the Linear params: W' = diag(gamma) @ W ; b' = beta @ W + b.
    w_f32 = w.astype(jnp.float32)
    w_folded = (gamma.astype(jnp.float32).reshape(H, 1) * w_f32).astype(jnp.bfloat16)
    b_folded = (beta.astype(jnp.float32) @ w_f32 + b.astype(jnp.float32)).reshape(1, H)

    # Row tile: multiple of 8 (sublane), <= rounded row count; keep >= 2 grid steps
    # whenever rows allow it so the 'parallel' axis spans both v7x TensorCores.
    tm = max(8, (min(int(row_tile), _round_up(rows, 8)) // 8) * 8)
    if pl.cdiv(rows, tm) < 2 and rows > 8:
        tm = _round_up(pl.cdiv(rows, 2), 8)
    grid_m = pl.cdiv(rows, tm)

    out_bytes = jnp.dtype(x.dtype).itemsize
    cost = pl.CostEstimate(
        flops=2 * rows * H * H,
        transcendentals=2 * rows,                               # sqrt + reciprocal per row
        bytes_accessed=rows * H * (4 + out_bytes) + H * H * 2 + H * 4,
    )

    # Column (N) tiling only when the resident (H,H) bf16 weight stresses VMEM
    # (v7x: 64 MiB physical / 32 MiB default scoped).
    if col_tile is None and H * H * 2 > (8 << 20) and H % 128 == 0:
        col_tile = 512 if H % 512 == 0 else 128
    use_ntiled = (col_tile is not None and col_tile < H
                  and H % col_tile == 0 and col_tile % 128 == 0)

    if not use_ntiled:
        # Working set: double-buffered x/out tiles + single-buffered weight/bias.
        ws = 2 * tm * H * 4 + 2 * tm * H * out_bytes + H * H * 2 + H * 4
        vmem_limit = min(64 << 20, max(32 << 20, 2 * ws + (8 << 20)))
        out = pl.pallas_call(
            functools.partial(_sublayer_kernel_full, eps=eps),
            out_shape=jax.ShapeDtypeStruct((rows, H), x.dtype),
            grid_spec=pltpu.PrefetchScalarGridSpec(
                num_scalar_prefetch=0,
                grid=(grid_m,),
                in_specs=[
                    pl.BlockSpec((tm, H), lambda i: (i, 0)),            # x rows (pipelined)
                    pl.BlockSpec((H, H), lambda i: (0, 0),              # weight, resident,
                                 pipeline_mode=pl.Buffered(1)),         #   single-buffered
                    pl.BlockSpec((1, H), lambda i: (0, 0),              # bias, resident
                                 pipeline_mode=pl.Buffered(1)),
                ],
                out_specs=pl.BlockSpec((tm, H), lambda i: (i, 0)),
            ),
            compiler_params=pltpu.CompilerParams(
                dimension_semantics=("parallel",),
                vmem_limit_bytes=int(vmem_limit)),
            cost_estimate=cost,
        )(x2, w_folded, b_folded)
    else:
        tn = int(col_tile)
        grid_n = H // tn
        ws = (2 * tm * H * 4 + 2 * tm * tn * 4 + 2 * tm * tn * out_bytes
              + 2 * H * tn * 2 + 2 * tn * 4 + tm * H * 2)
        vmem_limit = min(64 << 20, max(32 << 20, 2 * ws + (8 << 20)))
        out = pl.pallas_call(
            functools.partial(_sublayer_kernel_ntiled, eps=eps),
            out_shape=jax.ShapeDtypeStruct((rows, H), x.dtype),
            grid_spec=pltpu.PrefetchScalarGridSpec(
                num_scalar_prefetch=0,
                grid=(grid_m, grid_n),
                in_specs=[
                    pl.BlockSpec((tm, H), lambda i, j: (i, 0)),   # full rows for LN (j-invariant)
                    pl.BlockSpec((tm, tn), lambda i, j: (i, j)),  # residual columns
                    pl.BlockSpec((H, tn), lambda i, j: (0, j)),   # weight column tile
                    pl.BlockSpec((1, tn), lambda i, j: (0, j)),   # bias column tile
                ],
                out_specs=pl.BlockSpec((tm, tn), lambda i, j: (i, j)),
                scratch_shapes=[pltpu.VMEM((tm, H), jnp.bfloat16)],   # LN result, computed at j==0
            ),
            compiler_params=pltpu.CompilerParams(
                dimension_semantics=("parallel", "arbitrary"),
                vmem_limit_bytes=int(vmem_limit)),
            cost_estimate=cost,
        )(x2, x2, w_folded, b_folded)

    return out.reshape(B, S, H)


def _reference(x, gamma, beta, w, b, eps=1e-6):
    mean = jnp.mean(x, axis=-1, keepdims=True)
    std = jnp.std(x, axis=-1, keepdims=True, ddof=1)
    normed = gamma * (x - mean) / (std + eps) + beta
    return x + (normed @ w + b)


if __name__ == "__main__":
    key = jax.random.PRNGKey(0)
    k1, k2, k3, k4, k5, k6, k7 = jax.random.split(key, 7)

    # --- Test 1: module init values (gamma=1, beta=0), ragged row count -> partial tail tile
    B, S, H = 2, 9, 128
    x = jax.random.normal(k1, (B, S, H), dtype=jnp.float32)
    gamma = jnp.ones((H,), dtype=jnp.float32)
    beta = jnp.zeros((H,), dtype=jnp.float32)
    w = jax.random.normal(k2, (H, H), dtype=jnp.float32) * 0.02
    b = jax.random.normal(k3, (H,), dtype=jnp.float32) * 0.02

    out = jax.block_until_ready(sublayer_connection(x, gamma, beta, w, b))
    ref = _reference(x, gamma, beta, w, b)
    assert out.shape == (B, S, H)
    # tolerance accounts for bf16 MXU operands (LN math itself is exact f32)
    assert jnp.allclose(out, ref, atol=2e-2, rtol=2e-2), "mismatch vs reference (full path)"

    # --- Test 2: non-trivial gamma/beta (exercises the fold) + forced column tiling of the
    #             weight (v7x large-H path) + ragged rows (partial tail in the row grid)
    B2, S2, H2 = 2, 12, 256
    x2i = jax.random.normal(k4, (B2, S2, H2), dtype=jnp.float32)
    gamma2 = 1.0 + 0.1 * jax.random.normal(k5, (H2,), dtype=jnp.float32)
    beta2 = 0.05 * jax.random.normal(k6, (H2,), dtype=jnp.float32)
    w2 = jax.random.normal(k7, (H2, H2), dtype=jnp.float32) * 0.02
    b2 = jnp.zeros((H2,), dtype=jnp.float32)

    out2 = jax.block_until_ready(
        sublayer_connection(x2i, gamma2, beta2, w2, b2, col_tile=128))
    ref2 = _reference(x2i, gamma2, beta2, w2, b2)
    assert out2.shape == (B2, S2, H2)
    assert jnp.allclose(out2, ref2, atol=2e-2, rtol=2e-2), "mismatch vs reference (N-tiled path)"

    print("KERNEL_OK")
</pallas_src>

<mosaic_0001>
module attributes {stable_mosaic.version = 11 : i64} {
  func.func @_sublayer_kernel_full(%arg0: i32, %arg1: memref<16x128xf32, #tpu.memory_space<vmem>>, %arg2: memref<128x128xbf16, #tpu.memory_space<vmem>>, %arg3: memref<1x128xf32, #tpu.memory_space<vmem>>, %arg4: memref<16x128xf32, #tpu.memory_space<vmem>>) attributes {dimension_semantics = [#tpu.dimension_semantics<parallel>], iteration_bounds = array<i64: 2>, scalar_prefetch = 0 : i64, scratch_operands = 0 : i64, tpu.core_type = #tpu.core_type<tc>, window_params = [{transform_indices = @transform_0, window_bounds = array<i64: 16, 128>}, {pipeline_mode = #tpu.pipeline_mode<synchronous>, transform_indices = @transform_1, window_bounds = array<i64: 128, 128>}, {pipeline_mode = #tpu.pipeline_mode<synchronous>, transform_indices = @transform_2, window_bounds = array<i64: 1, 128>}, {transform_indices = @transform_3, window_bounds = array<i64: 16, 128>}]} {
    %c0 = arith.constant 0 : index
    %c0_0 = arith.constant 0 : index
    %0 = vector.load %arg1[%c0, %c0_0] : memref<16x128xf32, #tpu.memory_space<vmem>>, vector<16x128xf32>
    %cst = arith.constant dense<0.000000e+00> : vector<16xf32>
    %1 = vector.multi_reduction <add>, %0, %cst [1] : vector<16x128xf32> to vector<16xf32>
    %2 = vector.shape_cast %1 : vector<16xf32> to vector<16x1xf32>
    %cst_1 = arith.constant 7.812500e-03 : f32
    %3 = vector.broadcast %cst_1 : f32 to vector<16x1xf32>
    %4 = arith.mulf %2, %3 : vector<16x1xf32>
    %5 = vector.broadcast %4 : vector<16x1xf32> to vector<16x128xf32>
    %6 = arith.subf %0, %5 : vector<16x128xf32>
    %7 = arith.mulf %6, %6 : vector<16x128xf32>
    %cst_2 = arith.constant dense<0.000000e+00> : vector<16xf32>
    %8 = vector.multi_reduction <add>, %7, %cst_2 [1] : vector<16x128xf32> to vector<16xf32>
    %9 = vector.shape_cast %8 : vector<16xf32> to vector<16x1xf32>
    %cst_3 = arith.constant 0.00787401571 : f32
    %10 = vector.broadcast %cst_3 : f32 to vector<16x1xf32>
    %11 = arith.mulf %9, %10 : vector<16x1xf32>
    %12 = math.sqrt %11 : vector<16x1xf32>
    %cst_4 = arith.constant 9.99999997E-7 : f32
    %13 = vector.broadcast %cst_4 : f32 to vector<16x1xf32>
    %14 = arith.addf %12, %13 : vector<16x1xf32>
    %15 = tpu.reciprocal %14 : vector<16x1xf32> -> vector<16x1xf32>
    %16 = vector.broadcast %15 : vector<16x1xf32> to vector<16x128xf32>
    %17 = arith.mulf %6, %16 : vector<16x128xf32>
    %18 = arith.truncf %17 : vector<16x128xf32> to vector<16x128xbf16>
    %c0_5 = arith.constant 0 : index
    %c0_6 = arith.constant 0 : index
    %19 = vector.load %arg2[%c0_5, %c0_6] : memref<128x128xbf16, #tpu.memory_space<vmem>>, vector<128x128xbf16>
    %cst_7 = arith.constant dense<0.000000e+00> : vector<16x128xf32>
    %20 = tpu.matmul %18, %19, %cst_7 {dimension_numbers = #tpu.dot_dimension_numbers<[1], [0], [0], [1], [0, 0, 1, 1], [], []>} : vector<16x128xbf16>, vector<128x128xbf16>, vector<16x128xf32> -> vector<16x128xf32>
    %c0_8 = arith.constant 0 : index
    %c0_9 = arith.constant 0 : index
    %21 = vector.load %arg3[%c0_8, %c0_9] : memref<1x128xf32, #tpu.memory_space<vmem>>, vector<1x128xf32>
    %22 = vector.broadcast %21 : vector<1x128xf32> to vector<16x128xf32>
    %23 = arith.addf %20, %22 : vector<16x128xf32>
    %24 = arith.addf %0, %23 : vector<16x128xf32>
    %c0_10 = arith.constant 0 : index
    %c0_11 = arith.constant 0 : index
    %25 = vector.load %arg4[%c0_10, %c0_11] : memref<16x128xf32, #tpu.memory_space<vmem>>, vector<16x128xf32>
    tpu.vector_store %arg4[%c0_10, %c0_11], %24 {strides = array<i32>} : memref<16x128xf32, #tpu.memory_space<vmem>>, vector<16x128xf32>,
    return
  }
  func.func @transform_0(%arg0: i32) -> (i32, i32) {
    %c0_i32 = arith.constant 0 : i32
    %c0_i32_0 = arith.constant 0 : i32
    return %arg0, %c0_i32 : i32, i32
  }
  func.func @transform_1(%arg0: i32) -> (i32, i32) {
    %c0_i32 = arith.constant 0 : i32
    %c0_i32_0 = arith.constant 0 : i32
    %c0_i32_1 = arith.constant 0 : i32
    return %c0_i32, %c0_i32_0 : i32, i32
  }
  func.func @transform_2(%arg0: i32) -> (i32, i32) {
    %c0_i32 = arith.constant 0 : i32
    %c0_i32_0 = arith.constant 0 : i32
    %c0_i32_1 = arith.constant 0 : i32
    return %c0_i32, %c0_i32_0 : i32, i32
  }
  func.func @transform_3(%arg0: i32) -> (i32, i32) {
    %c0_i32 = arith.constant 0 : i32
    %c0_i32_0 = arith.constant 0 : i32
    return %arg0, %c0_i32 : i32, i32
  }
}

</mosaic_0001>

<bundles_post_ra>
// kernel: tpu_custom_call.1
= control target key start
LH: loop header
LB: loop body
LE: loop exit
PB: predicated region body
PF: predicated region fallthrough
CT: control target
= control target key end

     0   :  { %8 = vsyncpa [#allocation3], 0  ;;  %s1005_s0 = inlined_call_operand.hbm [shape: f32[18,128], index: 0, kind: input, shape index: {}]   ;;  %s1006_s1 = inlined_call_operand.hbm [shape: bf16[128,128], index: 1, kind: input, shape index: {}]   ;;  %s1007_s2 = inlined_call_operand.vmem [shape: f32[1,128], index: 2, kind: input, shape index: {}]   ;;  %s1008_s3 = inlined_call_operand.hbm [shape: f32[18,128], index: 3, kind: output, shape index: {}]  }
   0x1   :  { %10 = vsyncpa [#allocation3 + $0x1], 0 }
   0x2   :  { %11 = vsyncpa [#allocation6], 0 }
   0x3   :  { %12 = vsyncpa [#allocation4], 0 }
   0x4   :  { %14 = vsyncpa [#allocation4 + $0x1], 0  ;;  %s776_s12 = smov 0   ;;  %s778_s13 = smov 0  }
   0x5   :  { %s780_s14 = smov 0   ;;  %s782_s15 = smov 0  }
   0x6 LB: > { %s797_s16 = sadd.s32 4294967295, %s743_s15   ;;  %s479_s17 = sadd.s32 4294967294, %s743_s15   ;;  %s743_s15 = sphi %s782_s15, %s1028_s15   ;;  %s739_s14 = sphi %s780_s14, %s1027_s14   ;;  %s735_s13 = sphi %s778_s13, %s1026_s13   ;;  %s731_s12 = sphi %s776_s12, %s1025_s12  }
   0x7   : > { %s801_s18 = sadd.s32 1, %s743_s15   ;;  %s27_s19 = sadd.s32 1, %s739_s14 }
   0x8   : > { %s24_s20 = ssub.s32 %s743_s15, %s801_s18  ;;  %p34_p0 = scmp.ne.s32.totalorder %s739_s14, %s735_s13 }
   0x9   : > { %p25_p1 = scmp.eq.s32.totalorder %s24_s20, 0  ;;  %p35_p2 = scmp.eq.s32.totalorder %s743_s15, 0 }
   0xa   : > { %p40_p3 = scmp.ne.s32.totalorder %s735_s13, %s731_s12  ;;  %p1009_p4 = scmp.eq.s32.totalorder %s797_s16, 0 }
   0xb   : > { %s813_s21 = scalar_select %p25_p1, %s739_s14, %s27_s19  }
   0xc   : > { %p815_p5 = por %p35_p2, %p34_p0  ;;  %p821_p6 = por %p1009_p4, %p40_p3 }
   0xd   : > { %p106_p7 = scmp.eq.s32.totalorder %s797_s16, 1  ;;  %p112_p8 = scmp.eq.s32.totalorder %s479_s17, 1 }
   0xe   : > { %s1012_s22 = scalar_select %p815_p5, 1, 0 }
   0xf   : > { %s1013_s23 = scalar_select %p821_p6, 1, 0 }
  0x10   : > { %p480_p9 = scmp.ge.s32.totalorder %s743_s15, 1  ;;  %p119_p10 = scmp.lt.s32.totalorder %s743_s15, 3 }
  0x11   : > { %p828_p11 = por %p106_p7, %p34_p0  ;;  %p832_p12 = por %p112_p8, %p40_p3 }
  0x12   : > { %p836_p13 = pnand %p480_p9, %p119_p10  ;;  %s745_s27 = smov [#allocation5]  }
  0x13   : > { %s1014_s24 = scalar_select %p828_p11, 1, 0 }
  0x14   : > { %s1015_s25 = scalar_select %p832_p12, 1, 0 }
  0x15   : > { %s1016_s26 = scalar_select %p836_p13, 1, 0 }
  0x16   : > { %p549_p1 = pneg %p836_p13  ;;  %s131_s28 = sshll.u32 %s745_s27, 4  ;;  %s132_s28 = int_to_ptr.vmem [resolvable:$true] %s131_s28 }
  0x17   : > { %s617_s5 = scalar_lea.hbm %s1006_s1, 1024 }
  0x18   : > { %p844_p2 = pnand %p549_p1, %p1009_p4  ;;  %p618_p0 = scmp.ne.s32.totalorder %s1006_s1, %s617_s5 }
  0x19   : > { %p624_p9 = scmp.lt.u32.totalorder %s617_s5, %s1006_s1 }
  0x1a   : > { %p619_p3 = pneg %p844_p2 }
  0x1c   : > { %p620_p7 = pnand %p619_p3, %p618_p0 }
  0x1e   : > { %p621_p8 = pneg %p620_p7 }
  0x20   : > { %p626_p10 = pnand %p624_p9, %p621_p8 }
  0x22   : > { %629 = shalt.err (!%p626_p10)
}
  0x23   : > { %s630_s10 = scalar_lea.vmem %s132_s28, 1024  ;;  %p638_p11 = scmp.lt.s32.totalorder %s132_s28, %s132_s28 }
  0x24   : > { %p631_p1 = scmp.ne.s32.totalorder %s132_s28, %s630_s10  ;;  %p639_p6 = scmp.lt.s32.totalorder %s630_s10, %s630_s10 }
  0x26   : > { %p633_p4 = pnand %p631_p1, %p619_p3  ;;  %p640_p13 = por %p639_p6, %p638_p11 }
  0x28   : > { %p634_p12 = pneg %p633_p4 }
  0x2a   : > { %p641_p5 = pnand %p640_p13, %p634_p12 }
  0x2c   : > { %644 = shalt.err (!%p641_p5)
}
  0x2d   : > { %s746_s11 = smov 64   ;;  %s747_s17 = smov 4  }
  0x2e   : > { %552 = dma.hbm_to_vmem [thread:$0]  (!%p844_p2), %s1006_s1, 1024, %s132_s28, [#allocation6], %s746_s11, %s746_s11, %s747_s17  }
  0x2f   : > { %p482_p0 = scmp.ge.s32.totalorder %s743_s15, 2 }
  0x30   : > { %p1018_p4 = scmp.ne.s32.totalorder (!%p482_p0), %s1012_s22, 0 }
  0x31   : > { %144 = sbr.rel (%p482_p0) target bundleno = 91 (0x5b), region = 24 }
  0x38   : > { %147 = sbr.rel (!%p1018_p4) target bundleno = 91 (0x5b), region = 28  ;;  %s148_s27 = sand.u32 (%p1018_p4), 1, %s739_s14  }
  0x39   : > { %s484_s30 = sshll.u32 (%p1018_p4), %s743_s15, 1  ;;  %s483_s4 = sshll.u32 (%p1018_p4), %s148_s27, 4 }
  0x3a   : > { %s154_s5 = ssub.s32 (%p1018_p4), 3, %s484_s30  ;;  %s874_s6 = scalar_lea.sflag (%p1018_p4), [#allocation3], %s148_s27 }
  0x3b   : > { %p155_p5 = scmp.lt.s32.totalorder (%p1018_p4), %s154_s5, 2  ;;  %s152_s7 = scalar_lea.vmem (%p1018_p4), [#allocation2], %s483_s4 }
  0x3f   : > { %s1030_s5 = smov (!%p155_p5, %s154_s5), 2 }
  0x40   : > { %s871_s29 = sshll.u32 %s1030_s5, 7 }
  0x41   : > { %s159_s28 = ssub.s32 256, %s871_s29 }
  0x42   : > { %160 = vsyncadd %s874_s6, %s159_s28  ;;  %p486_p6 = scmp.ne.s32.totalorder %s871_s29, 0  ;;  %s512_s22 = sshll.u32 %s743_s15, 8 }
  0x43   : > { %s882_s10 = scalar_lea.hbm %s1005_s0, %s512_s22  ;;  %s165_s11 = sshll.u32 %s152_s7, 4  ;;  %s884_s11 = int_to_ptr.vmem [resolvable:$true] %s165_s11 }
  0x44   : > { %s645_s17 = scalar_lea.hbm %s882_s10, %s871_s29  ;;  %s649_s27 = scalar_lea.hbm %s1005_s0, 384 }
  0x45   : > { %p646_p11 = scmp.ne.s32.totalorder %s882_s10, %s645_s17  ;;  %p650_p2 = scmp.lt.u32.totalorder %s882_s10, %s1005_s0 }
  0x46   : > { %p651_p3 = scmp.lt.u32.totalorder %s649_s27, %s645_s17  ;;  %p653_p8 = scmp.lt.u32.totalorder %s645_s17, %s882_s10 }
  0x47   : > { %p647_p12 = pnand %p646_p11, %p486_p6 }
  0x48   : > { %p652_p7 = por %p651_p3, %p650_p2 }
  0x49   : > { %p648_p13 = pneg %p647_p12 }
  0x4a   : > { %p654_p9 = por %p653_p8, %p652_p7 }
  0x4c   : > { %p655_p10 = pnand %p654_p9, %p648_p13 }
  0x4e   : > { %658 = shalt.err (!%p655_p10)
}
  0x4f   : > { %s659_s5 = scalar_lea.vmem %s884_s11, %s871_s29  ;;  %s748_s28 = smov [#allocation2]  }
  0x50   : > { %p660_p1 = scmp.ne.s32.totalorder %s884_s11, %s659_s5  ;;  %s663_s7 = sshll.u32 %s748_s28, 4  ;;  %s664_s7 = int_to_ptr.vmem [resolvable:$false] %s663_s7 }
  0x51   : > { %s665_s22 = scalar_lea.vmem %s664_s7, 512  ;;  %p666_p11 = scmp.lt.s32.totalorder %s884_s11, %s664_s7 }
  0x52   : > { %p661_p4 = pnand %p660_p1, %p486_p6  ;;  %p667_p12 = scmp.lt.s32.totalorder %s665_s22, %s659_s5 }
  0x54   : > { %p662_p5 = pneg %p661_p4  ;;  %p668_p2 = por %p667_p12, %p666_p11 }
  0x56   : > { %p669_p3 = pnand %p668_p2, %p662_p5 }
  0x58   : > { %672 = shalt.err (!%p669_p3)
}
  0x59   : > { %s749_s8 = smov 128   ;;  %s750_s9 = smov 8  }
  0x5a   : > { %171 = dma.hbm_to_vmem [thread:$0]  (%p486_p6), %s882_s10, %s871_s29, %s884_s11, %s874_s6, %s749_s8, %s749_s8, %s750_s9  }
  0x5b PF: > { %p1019_p13 = scmp.ne.s32.totalorder %s1016_s26, 0 }
  0x5c   : > { %s914_s17 = sand.u32 (!%p1019_p13), 1, %s735_s13   ;;  %p1020_p7 = scmp.ne.s32.totalorder (!%p1019_p13), %s1013_s23, 0 }
  0x5d   : > { %177 = sbr.rel (%p1019_p13) target bundleno = 680 (0x2a8), region = 32  ;;  %s491_s19 = sshll.u32 (!%p1019_p13), %s914_s17, 4 }
  0x5e   : > { %s180_s20 = scalar_lea.sflag (!%p1019_p13), [#allocation3], %s914_s17  ;;  %s183_s27 = scalar_lea.vmem (!%p1019_p13), [#allocation2], %s491_s19 }
  0x64   : > { %718 = dma.done.wait (%p1020_p7), %s180_s20, 256  }
  0x65   : > { %720 = vsyncadd (%p1020_p7), %s180_s20, 4294967040  ;;  %p1021_p6 = scmp.eq.s32.totalorder %s797_s16, 0 }
  0x67   : > { %722 = dma.done.wait (%p1021_p6), [#allocation6], 1024   ;;  %p1022_p8 = pmov %p1021_p6 }
  0x68   : > { %v928_v0 = vld [vmem:[%s183_s27] sm:$0xff]  ;;  %v930_v1 = vld [vmem:[%s183_s27 + $0x8] sm:$0xff]  ;;  %v751_v11 = vmov 0.0   ;;  %vm752_vm0 = vmmov 0   ;;  %s209_s29 = scalar_lea.vmem [#allocation7], %s491_s19  ;;  %s377_s6 = scalar_lea.sflag [#allocation4], %s914_s17 }
  0x69   : > { %724 = vsyncadd (%p1022_p8), [#allocation6], 4294966272  ;;  %223 = vadd.xlane.f32.xlu0 %v928_v0  ;;  %v601_v10 = vld [vmem:[#allocation5] sm:$0xff]   ;;  %523 = vmatprep.subr.bf16.mxu0 %v751_v11  ;;  %v602_v12 = vld [vmem:[#allocation5 + $0x8] sm:$0xff]   ;;  %p1023_p9 = scmp.ne.s32.totalorder %s1014_s24, 0 }
  0x6a   : > { %524 = vmatpush3.bf16.msra.mxu0 %v601_v10  ;;  %v603_v13 = vld [vmem:[#allocation5 + $0x10] sm:$0xff]   ;;  %v604_v14 = vld [vmem:[#allocation5 + $0x18] sm:$0xff]   ;;  %v605_v15 = vld [vmem:[#allocation5 + $0x20] sm:$0xff]   ;;  %539 = vmatprep.mubr.msk.bf16.mxu0 %vm752_vm0, %v751_v11  ;;  %s504_s10 = sshll.u32 (%p1023_p9), %s797_s16, 1 }
  0x6b   : > { %525 = vmatprep.subr.bf16.mxu0 %v751_v11  ;;  %v606_v16 = vld [vmem:[#allocation5 + $0x28] sm:$0xff]   ;;  %v607_v17 = vld [vmem:[#allocation5 + $0x30] sm:$0xff]   ;;  %v608_v18 = vld [vmem:[#allocation5 + $0x38] sm:$0xff]   ;;  %s385_s11 = ssub.s32 (%p1023_p9), 3, %s504_s10 }
  0x6c   : > { %v494_v40 = vld [vmem:[%s1007_s2] ss:$0 sm:$0xff]  ;;  %p386_p10 = scmp.lt.s32.totalorder (%p1023_p9), %s385_s11, 2 }
  0x6d   : > { %225 = vadd.xlane.f32.xlu0 %v930_v1 }
  0x6e   : > { %526 = vmatpush3.bf16.msra.mxu0 %v602_v12 }
  0x6f   : > { %527 = vmatprep.subr.bf16.mxu0 %v751_v11 }
  0x72   : > { %528 = vmatpush3.bf16.msra.mxu0 %v603_v13 }
  0x73   : > { %529 = vmatprep.subr.bf16.mxu0 %v751_v11 }
  0x76   : > { %530 = vmatpush3.bf16.msra.mxu0 %v604_v14 }
  0x77   : > { %531 = vmatprep.subr.bf16.mxu0 %v751_v11 }
  0x7a   : > { %532 = vmatpush3.bf16.msra.mxu0 %v605_v15 }
  0x7b   : > { %533 = vmatprep.subr.bf16.mxu0 %v751_v11 }
  0x7e   : > { %534 = vmatpush3.bf16.msra.mxu0 %v606_v16 }
  0x7f   : > { %535 = vmatprep.subr.bf16.mxu0 %v751_v11 }
  0x82   : > { %536 = vmatpush3.bf16.msra.mxu0 %v607_v17 }
  0x83   : > { %537 = vmatprep.subr.bf16.mxu0 %v751_v11 }
  0x86   : > { %538 = vmatpush3.bf16.msra.mxu0 %v608_v18 }
  0xf6   : > { %v224_v2 = vpop.xlane.xlu0 %223 }
  0xf7   : > { %v227_v3 = vmul.f32 0.0078125, %v224_v2 }
  0xf9   : > { %v229_v4 = vsub.f32 %v928_v0, %v227_v3 }
  0xfa   : > { %v226_v5 = vpop.xlane.xlu0 %225 }
  0xfb   : > { %v228_v6 = vmul.f32 0.0078125, %v226_v5  ;;  %v231_v7 = vmul.f32 %v229_v4, %v229_v4 }
  0xfd   : > { %v230_v8 = vsub.f32 %v930_v1, %v228_v6  ;;  %233 = vadd.xlane.f32.xlu1 %v231_v7 }
  0xff   : > { %v232_v9 = vmul.f32 %v230_v8, %v230_v8 }
 0x101   : > { %235 = vadd.xlane.f32.xlu1 %v232_v9 }
 0x18a   : > { %v234_v19 = vpop.xlane.xlu1 %233 }
 0x18b   : > { %v237_v20 = vmul.f32 0.007874016, %v234_v19 }
 0x18d   : > { %609 = vrsqrt.f32 %v237_v20  ;;  %vm241_vm1 = vcmp.eq.f32.partialorder %v237_v20, inf  ;;  %v244_v25 = vand.u32 2147483648, %v237_v20  ;;  %vm243_vm2 = vcmp.eq.f32.partialorder %v237_v20, 0.0 }
 0x18e   : > { %v236_v21 = vpop.xlane.xlu1 %235 }
 0x18f   : > { %v238_v22 = vmul.f32 0.007874016, %v236_v21 }
 0x191   : > { %611 = vrsqrt.f32 %v238_v22  ;;  %vm248_vm3 = vcmp.eq.f32.partialorder %v238_v22, inf  ;;  %v251_v31 = vand.u32 2147483648, %v238_v22  ;;  %vm250_vm4 = vcmp.eq.f32.partialorder %v238_v22, 0.0 }
 0x197   : > { %v610_v23 = vpop.eup %609 }
 0x198   : > { %v240_v24 = vmul.f32 %v610_v23, %v237_v20 }
 0x19a   : > { %v242_v26 = vsel %vm241_vm1, %v237_v20, %v240_v24 }
 0x19b   : > { %v612_v27 = vpop.eup %611  ;;  %v245_v28 = vsel %vm243_vm2, %v244_v25, %v242_v26 }
 0x19c   : > { %v247_v29 = vmul.f32 %v612_v27, %v238_v22  ;;  %v253_v30 = vadd.f32 1e-06, %v245_v28 }
 0x19e   : > { %v249_v32 = vsel %vm248_vm3, %v238_v22, %v247_v29  ;;  %613 = vrcp.f32 %v253_v30 }
 0x19f   : > { %v252_v33 = vsel %vm250_vm4, %v251_v31, %v249_v32 }
 0x1a0   : > { %v254_v34 = vadd.f32 1e-06, %v252_v33 }
 0x1a2   : > { %615 = vrcp.f32 %v254_v34 }
 0x1a8   : > { %v614_v35 = vpop.eup %613 }
 0x1a9   : > { %v257_v37 = vmul.f32 %v614_v35, %v229_v4 }
 0x1ac   : > { %v616_v36 = vpop.eup %615 }
 0x1ad   : > { %v258_v38 = vmul.f32 %v616_v36, %v230_v8 }
 0x1af   : > { %v259_v39 = vpack.c.bf16 %v258_v38, %v257_v37 }
 0x1b1   : > { %540 = vmatmul.mubr.bf16.vlgmr.msra.gmra.mrb[0].mxu0 %v259_v39 }
 0x284   : > { %v365_v41 = vpop.f32.mrb[0].mxu0 }
 0x285   : > { %v366_v42 = vadd.f32 %v494_v40, %v365_v41  ;;  %v541_v43 = vpop.f32.mrb[1].mxu0  ;;  %383 = sbr.rel (!%p1023_p9) target bundleno = 680 (0x2a8), region = 44 }
 0x286   : > { %v368_v44 = vpop.f32.mrb[2].mxu0 }
 0x287   : > { %v372_v45 = vadd.f32 %v366_v42, %v928_v0  ;;  %v369_v46 = vadd.f32 %v494_v40, %v368_v44  ;;  %v542_v47 = vpop.f32.mrb[3].mxu0 }
 0x289   : > { %374 = vst [vmem:[%s209_s29] sm:$0xff] %v372_v45  ;;  %v373_v48 = vadd.f32 %v369_v46, %v930_v1 }
 0x28b   : > { %375 = vst [vmem:[%s209_s29 + $0x8] sm:$0xff] %v373_v48 }
 0x28c   : > { %s1032_s11 = smov (!%p386_p10, %s385_s11), 2 }
 0x28d   : > { %s947_s30 = sshll.u32 %s1032_s11, 7 }
 0x28e   : > { %s390_s4 = ssub.s32 256, %s947_s30 }
 0x28f   : > { %391 = vsyncadd %s377_s6, %s390_s4  ;;  %p506_p1 = scmp.ne.s32.totalorder %s947_s30, 0  ;;  %s513_s5 = sshll.u32 %s797_s16, 8 }
 0x290   : > { %s957_s7 = scalar_lea.hbm %s1008_s3, %s513_s5  ;;  %s396_s22 = sshll.u32 %s209_s29, 4  ;;  %s959_s22 = int_to_ptr.vmem [resolvable:$true] %s396_s22 }
 0x291   : > { %s673_s8 = scalar_lea.vmem %s959_s22, %s947_s30  ;;  %s753_s9 = smov [#allocation7]  }
 0x292   : > { %p674_p4 = scmp.ne.s32.totalorder %s959_s22, %s673_s8  ;;  %s677_s19 = sshll.u32 %s753_s9, 4  ;;  %s678_s19 = int_to_ptr.vmem [resolvable:$false] %s677_s19 }
 0x293   : > { %s679_s16 = scalar_lea.vmem %s678_s19, 512  ;;  %p680_p12 = scmp.lt.s32.totalorder %s959_s22, %s678_s19 }
 0x294   : > { %p675_p5 = pnand %p674_p4, %p506_p1  ;;  %p681_p2 = scmp.lt.s32.totalorder %s679_s16, %s673_s8 }
 0x296   : > { %p676_p11 = pneg %p675_p5  ;;  %p682_p3 = por %p681_p2, %p680_p12 }
 0x298   : > { %p683_p13 = pnand %p682_p3, %p676_p11 }
 0x29a   : > { %686 = shalt.err (!%p683_p13)
}
 0x29b   : > { %s687_s20 = scalar_lea.hbm %s957_s7, %s947_s30  ;;  %s691_s26 = scalar_lea.hbm %s1008_s3, 384 }
 0x29c   : > { %p688_p7 = scmp.ne.s32.totalorder %s957_s7, %s687_s20  ;;  %p692_p9 = scmp.lt.u32.totalorder %s957_s7, %s1008_s3 }
 0x29d   : > { %p693_p10 = scmp.lt.u32.totalorder %s691_s26, %s687_s20  ;;  %p695_p5 = scmp.lt.u32.totalorder %s687_s20, %s957_s7 }
 0x29e   : > { %p689_p6 = pnand %p688_p7, %p506_p1 }
 0x29f   : > { %p694_p4 = por %p693_p10, %p692_p9 }
 0x2a0   : > { %p690_p8 = pneg %p689_p6 }
 0x2a1   : > { %p696_p11 = por %p695_p5, %p694_p4 }
 0x2a3   : > { %p697_p12 = pnand %p696_p11, %p690_p8 }
 0x2a5   : > { %700 = shalt.err (!%p697_p12)
}
 0x2a6   : > { %s754_s11 = smov 128   ;;  %s755_s4 = smov 8  }
 0x2a7   : > { %402 = dma.vmem_to_hbm [thread:$0]  (%p506_p1), %s959_s22, %s947_s30, %s957_s7, %s377_s6, %s754_s11, %s754_s11, %s755_s4  }
 0x2a8 PF: > { %s411_s5 = sand.u32 1, %s731_s12   ;;  %p1024_p2 = scmp.ne.s32.totalorder %s1015_s25, 0 }
 0x2a9   : > { %s412_s24 = scalar_lea.sflag [#allocation4], %s411_s5 }
 0x2aa   : > { %p554_p3 = pnand %p482_p0, %p1024_p2 }
 0x2ac   : > { %726 = dma.done.wait (!%p554_p3), %s412_s24, 256  }
 0x2ad   : > { %728 = vsyncadd (!%p554_p3), %s412_s24, 4294967040  ;;  %p17_p13 = scmp.ge.s32.totalorder %s801_s18, 4   ;;  %s1025_s12 = smov %s735_s13 }
 0x2ae   : > { %s1026_s13 = smov %s739_s14  ;;  %s1027_s14 = smov %s813_s21 }
 0x2af   : > { %s1028_s15 = smov %s801_s18  ;;  %19 = sbr.rel (!%p17_p13) target bundleno = 6 (0x6), region = 81 }
 0x2b6   :  { %417 = vsyncpa [#allocation3], 1 }
 0x2b7   :  { %419 = vsyncpa [#allocation3 + $0x1], 1 }
 0x2b8   :  { %420 = vsyncpa [#allocation6], 1 }
 0x2b9   :  { %421 = vsyncpa [#allocation4], 1 }
 0x2ba   :  { %423 = vsyncpa [#allocation4 + $0x1], 1 }

</bundles_post_ra>
